<compile_context>
chip_gen: v7x
topology: tpu7x:2x2x1
jax: 0.10.0
libtpu: 0.0.40
codegen_flags: <defaults>
</compile_context>

<pallas_src>
import functools

import jax
import jax.numpy as jnp
from jax.experimental import pallas as pl
from jax.experimental.pallas import tpu as pltpu


def _round_up(n, m):
    return ((n + m - 1) // m) * m


# ---------------------------------------------------------------------------
# Kernel
# ---------------------------------------------------------------------------
def vae_kernel(
    x_ref, eps_ref,
    w1_ref, b1_ref,          # encoder linear 1: input_dim -> hidden_dim
    w2_ref, b2_ref,          # encoder linear 2: hidden_dim -> hidden_dim // 2
    wh_ref, bh_ref,          # fused fc_mu|fc_logvar: hidden//2 -> 2*latent (padded to 128)
    wd1_ref, bd1_ref,        # decoder linear 1: latent_dim -> hidden_dim // 2
    wd2_ref, bd2_ref,        # decoder linear 2: hidden_dim // 2 -> hidden_dim
    wd3_ref, bd3_ref,        # decoder linear 3: hidden_dim -> input_dim (padded to 128 mult)
    recon_ref, head_ref,
    *, latent_dim,
):
    def dense(a, w_ref, b_ref):
        # Activations are cast to the weight dtype (f32 or bf16); the MXU
        # accumulates in f32 and the f32 bias add keeps the result f32.
        return jnp.dot(a.astype(w_ref.dtype), w_ref[...],
                       preferred_element_type=jnp.float32) + b_ref[...]

    x = x_ref[...]

    # ---- encoder ----
    h = jnp.maximum(dense(x, w1_ref, b1_ref), 0.0)
    h = jnp.maximum(dense(h, w2_ref, b2_ref), 0.0)

    # ---- fused latent heads (single MXU matmul, lane-dense padded output) ----
    head = dense(h, wh_ref, bh_ref)                      # [TB, head_pad] f32
    mu = head[:, :latent_dim]
    logvar = head[:, latent_dim:2 * latent_dim]

    # ---- reparameterize (kept f32): z = mu + eps * exp(0.5 * logvar) ----
    eps = eps_ref[...][:, :latent_dim]
    z = mu + eps * jnp.exp(0.5 * logvar)

    # ---- decoder ----
    d = jnp.maximum(dense(z, wd1_ref, bd1_ref), 0.0)
    d = jnp.maximum(dense(d, wd2_ref, bd2_ref), 0.0)
    recon = dense(d, wd3_ref, bd3_ref)

    recon_ref[...] = recon.astype(recon_ref.dtype)
    head_ref[...] = head.astype(head_ref.dtype)


# ---------------------------------------------------------------------------
# One-time parameter preparation (call once at model-load time)
# ---------------------------------------------------------------------------
def prepare_params(params, *, compute_dtype=jnp.float32):
    """Pack/pad/cast the VAE weights for the kernel.  Do this ONCE, not per call."""
    cd = jnp.zeros((), compute_dtype).dtype
    w1 = jnp.asarray(params["w1"])
    input_dim, hidden_dim = w1.shape
    half = hidden_dim // 2
    latent_dim = jnp.asarray(params["wmu"]).shape[1]
    head_dim = 2 * latent_dim
    head_pad = _round_up(head_dim, 128)      # one 128-lane block for latent<=64
    recon_pad = _round_up(input_dim, 128)

    def b_row(b):                            # biases stay f32, shape [1, out]
        return jnp.asarray(b, jnp.float32).reshape(1, -1)

    # fused fc_mu | fc_logvar head, zero-padded to a full 128-lane block
    whead = jnp.zeros((half, head_pad), cd)
    whead = whead.at[:, :latent_dim].set(jnp.asarray(params["wmu"], cd))
    whead = whead.at[:, latent_dim:head_dim].set(jnp.asarray(params["wlv"], cd))
    bhead = jnp.zeros((1, head_pad), jnp.float32)
    bhead = bhead.at[:, :latent_dim].set(b_row(params["bmu"]))
    bhead = bhead.at[:, latent_dim:head_dim].set(b_row(params["blv"]))

    # reconstruction head, zero-padded to a 128-lane multiple (unmasked vst)
    wd3 = jnp.zeros((hidden_dim, recon_pad), cd)
    wd3 = wd3.at[:, :input_dim].set(jnp.asarray(params["wd3"], cd))
    bd3 = jnp.zeros((1, recon_pad), jnp.float32)
    bd3 = bd3.at[:, :input_dim].set(b_row(params["bd3"]))

    weights = (
        jnp.asarray(params["w1"], cd), b_row(params["b1"]),
        jnp.asarray(params["w2"], cd), b_row(params["b2"]),
        whead, bhead,
        jnp.asarray(params["wd1"], cd), b_row(params["bd1"]),
        jnp.asarray(params["wd2"], cd), b_row(params["bd2"]),
        wd3, bd3,
    )
    weights = tuple(jax.block_until_ready(w) for w in weights)

    sublane = {4: 8, 2: 16, 1: 32}.get(cd.itemsize, 8)
    return dict(
        weights=weights,
        input_dim=input_dim, hidden_dim=hidden_dim, half=half,
        latent_dim=latent_dim, head_dim=head_dim,
        head_pad=head_pad, recon_pad=recon_pad,
        compute_dtype=cd, sublane=sublane,
    )


# ---------------------------------------------------------------------------
# Forward wrapper
# ---------------------------------------------------------------------------
def _choose_tb(batch, block_batch, sublane):
    bb = max(sublane, (block_batch // sublane) * sublane)
    if batch > bb:
        return bb
    if batch <= sublane:
        return sublane
    # batch fits in <= 2 tiles: split into 2 grid steps so the "parallel"
    # axis can be sharded across both v7x TensorCores (no-op on v5e/v6e).
    return _round_up(pl.cdiv(batch, 2), sublane)


def _forward_impl(x, eps, prep, *, block_batch, single_buffer_weights):
    B, input_dim = x.shape
    assert input_dim == prep["input_dim"], "x feature dim mismatch"
    latent_dim = prep["latent_dim"]
    assert eps.shape[0] == B and eps.shape[1] >= latent_dim
    eps_width = eps.shape[1]
    head_pad, recon_pad = prep["head_pad"], prep["recon_pad"]
    hidden_dim, half = prep["hidden_dim"], prep["half"]
    weights = prep["weights"]

    x = x.astype(jnp.float32)
    eps = eps.astype(jnp.float32)

    TB = _choose_tb(B, block_batch, prep["sublane"])
    grid = (pl.cdiv(B, TB),)   # ragged last block handled by Pallas; no pad copies

    def act_spec(feat):
        return pl.BlockSpec((TB, feat), lambda i: (i, 0))

    def weight_spec(arr):
        # Constant index_map: the block stays resident in VMEM for the whole
        # grid; Buffered(1) avoids allocating a useless second buffer.
        if single_buffer_weights:
            return pl.BlockSpec(arr.shape, lambda i: (0, 0),
                                pipeline_mode=pl.Buffered(1))
        return pl.BlockSpec(arr.shape, lambda i: (0, 0))

    in_specs = [act_spec(input_dim), act_spec(eps_width)]
    in_specs += [weight_spec(w) for w in weights]
    out_specs = (act_spec(recon_pad), act_spec(head_pad))
    out_shape = (jax.ShapeDtypeStruct((B, recon_pad), jnp.float32),
                 jax.ShapeDtypeStruct((B, head_pad), jnp.float32))

    # VMEM budget: resident weights (x1 if single-buffered, else x2) plus
    # double-buffered activation tiles, ~30% headroom, clamped to [16, 64] MiB.
    weight_bytes = sum(int(w.size) * w.dtype.itemsize for w in weights)
    act_tile_bytes = 2 * TB * (input_dim + eps_width + recon_pad + head_pad) * 4
    need = (1 if single_buffer_weights else 2) * weight_bytes + act_tile_bytes
    vmem_limit = int(min(64 * 2 ** 20,
                         max(16 * 2 ** 20, int(need * 1.3) + (2 << 20))))

    flops = 2 * B * (input_dim * hidden_dim + hidden_dim * half
                     + half * head_pad + latent_dim * half
                     + half * hidden_dim + hidden_dim * recon_pad)
    bytes_accessed = int(x.size * 4 + eps.size * 4 + weight_bytes
                         + B * (recon_pad + head_pad) * 4)
    cost = pl.CostEstimate(flops=int(flops),
                           transcendentals=int(B * latent_dim),
                           bytes_accessed=bytes_accessed)

    recon_p, head_p = pl.pallas_call(
        functools.partial(vae_kernel, latent_dim=latent_dim),
        out_shape=out_shape,
        grid=grid,
        in_specs=in_specs,
        out_specs=out_specs,
        compiler_params=pltpu.CompilerParams(
            dimension_semantics=("parallel",),
            vmem_limit_bytes=vmem_limit,
        ),
        cost_estimate=cost,
    )(x, eps, *weights)

    recon = recon_p[:, :input_dim]
    mu = head_p[:, :latent_dim]
    logvar = head_p[:, latent_dim:prep["head_dim"]]
    return recon, mu, logvar


_SINGLE_BUFFER_OK = None  # cache: does this jax accept pl.Buffered(1)?


def fully_connected_vae_forward(x, eps, prep, *, block_batch=512):
    """VAE forward. `prep` comes from prepare_params() (call that once)."""
    global _SINGLE_BUFFER_OK
    if _SINGLE_BUFFER_OK is None:
        try:
            out = jax.block_until_ready(
                _forward_impl(x, eps, prep, block_batch=block_batch,
                              single_buffer_weights=True))
            _SINGLE_BUFFER_OK = True
            return out
        except Exception:
            # TODO(synk): pl.Buffered(1) single-buffering rejected by this jax
            # version; resident weights fall back to default double buffering.
            _SINGLE_BUFFER_OK = False
    return _forward_impl(x, eps, prep, block_batch=block_batch,
                         single_buffer_weights=_SINGLE_BUFFER_OK)


# ---------------------------------------------------------------------------
# Init, pure-JAX reference, self-test
# ---------------------------------------------------------------------------
def init_linear(key, fan_in, fan_out):
    """PyTorch nn.Linear default init: U(-1/sqrt(fan_in), 1/sqrt(fan_in))."""
    kw, kb = jax.random.split(key)
    bound = 1.0 / float(fan_in) ** 0.5
    w = jax.random.uniform(kw, (fan_in, fan_out), jnp.float32, -bound, bound)
    b = jax.random.uniform(kb, (fan_out,), jnp.float32, -bound, bound)
    return w, b


def make_params(key, input_dim, hidden_dim, latent_dim):
    half = hidden_dim // 2
    keys = jax.random.split(key, 7)
    p = {}
    p["w1"], p["b1"] = init_linear(keys[0], input_dim, hidden_dim)
    p["w2"], p["b2"] = init_linear(keys[1], hidden_dim, half)
    p["wmu"], p["bmu"] = init_linear(keys[2], half, latent_dim)
    p["wlv"], p["blv"] = init_linear(keys[3], half, latent_dim)
    p["wd1"], p["bd1"] = init_linear(keys[4], latent_dim, half)
    p["wd2"], p["bd2"] = init_linear(keys[5], half, hidden_dim)
    p["wd3"], p["bd3"] = init_linear(keys[6], hidden_dim, input_dim)
    return p


def reference_forward(x, eps, p):
    """Pure-JAX f32 reference replicating the PyTorch module."""
    h = jnp.maximum(x @ p["w1"] + p["b1"], 0.0)
    h = jnp.maximum(h @ p["w2"] + p["b2"], 0.0)
    mu = h @ p["wmu"] + p["bmu"]
    logvar = h @ p["wlv"] + p["blv"]
    z = mu + eps * jnp.exp(0.5 * logvar)
    d = jnp.maximum(z @ p["wd1"] + p["bd1"], 0.0)
    d = jnp.maximum(d @ p["wd2"] + p["bd2"], 0.0)
    recon = d @ p["wd3"] + p["bd3"]
    return recon, mu, logvar


def _check(x, eps, params, prep, *, block_batch, atol, rtol):
    latent_dim = prep["latent_dim"]
    recon, mu, logvar = jax.block_until_ready(
        fully_connected_vae_forward(x, eps, prep, block_batch=block_batch))
    ref_recon, ref_mu, ref_logvar = reference_forward(x, eps[:, :latent_dim], params)
    assert recon.shape == ref_recon.shape
    assert mu.shape == ref_mu.shape and logvar.shape == ref_logvar.shape
    assert jnp.allclose(recon, ref_recon, atol=atol, rtol=rtol)
    assert jnp.allclose(mu, ref_mu, atol=atol, rtol=rtol)
    assert jnp.allclose(logvar, ref_logvar, atol=atol, rtol=rtol)


if __name__ == "__main__":
    input_dim, hidden_dim, latent_dim = 64, 32, 8
    key = jax.random.PRNGKey(0)
    kp, kx1, ke1, kx2, ke2 = jax.random.split(key, 5)
    params = make_params(kp, input_dim, hidden_dim, latent_dim)

    # One-time weight prep (packing / padding / casts) hoisted out of forward.
    prep_f32 = prepare_params(params, compute_dtype=jnp.float32)

    # eps stands in for torch.randn_like(std); generated lane-dense (128 cols,
    # only the first latent_dim columns are used) so its DMA is efficient.
    x1 = jax.random.normal(kx1, (8, input_dim), jnp.float32)
    eps1 = jax.random.normal(ke1, (8, 128), jnp.float32)
    _check(x1, eps1, params, prep_f32, block_batch=512, atol=1e-4, rtol=1e-4)

    # ragged multi-step batch grid (B % TB != 0), no input padding copies
    x2 = jax.random.normal(kx2, (40, input_dim), jnp.float32)
    eps2 = jax.random.normal(ke2, (40, 128), jnp.float32)
    _check(x2, eps2, params, prep_f32, block_batch=16, atol=1e-4, rtol=1e-4)

    # bf16 compute path (v6e/v7x MXU-native; f32 accumulation + f32 reparam)
    prep_bf16 = prepare_params(params, compute_dtype=jnp.bfloat16)
    _check(x2, eps2, params, prep_bf16, block_batch=512, atol=1e-1, rtol=1e-1)

    print("KERNEL_OK")
</pallas_src>

<mosaic_0001>
module attributes {stable_mosaic.version = 11 : i64} {
  func.func @vae_kernel(%arg0: i32, %arg1: memref<8x64xf32, #tpu.memory_space<vmem>>, %arg2: memref<8x128xf32, #tpu.memory_space<vmem>>, %arg3: memref<64x32xf32, #tpu.memory_space<vmem>>, %arg4: memref<1x32xf32, #tpu.memory_space<vmem>>, %arg5: memref<32x16xf32, #tpu.memory_space<vmem>>, %arg6: memref<1x16xf32, #tpu.memory_space<vmem>>, %arg7: memref<16x128xf32, #tpu.memory_space<vmem>>, %arg8: memref<1x128xf32, #tpu.memory_space<vmem>>, %arg9: memref<8x16xf32, #tpu.memory_space<vmem>>, %arg10: memref<1x16xf32, #tpu.memory_space<vmem>>, %arg11: memref<16x32xf32, #tpu.memory_space<vmem>>, %arg12: memref<1x32xf32, #tpu.memory_space<vmem>>, %arg13: memref<32x128xf32, #tpu.memory_space<vmem>>, %arg14: memref<1x128xf32, #tpu.memory_space<vmem>>, %arg15: memref<8x128xf32, #tpu.memory_space<vmem>>, %arg16: memref<8x128xf32, #tpu.memory_space<vmem>>) attributes {dimension_semantics = [#tpu.dimension_semantics<parallel>], iteration_bounds = array<i64: 1>, scalar_prefetch = 0 : i64, scratch_operands = 0 : i64, tpu.core_type = #tpu.core_type<tc>, window_params = [{transform_indices = @transform_0, window_bounds = array<i64: 8, 64>}, {transform_indices = @transform_1, window_bounds = array<i64: 8, 128>}, {pipeline_mode = #tpu.pipeline_mode<synchronous>, transform_indices = @transform_2, window_bounds = array<i64: 64, 32>}, {pipeline_mode = #tpu.pipeline_mode<synchronous>, transform_indices = @transform_3, window_bounds = array<i64: 1, 32>}, {pipeline_mode = #tpu.pipeline_mode<synchronous>, transform_indices = @transform_4, window_bounds = array<i64: 32, 16>}, {pipeline_mode = #tpu.pipeline_mode<synchronous>, transform_indices = @transform_5, window_bounds = array<i64: 1, 16>}, {pipeline_mode = #tpu.pipeline_mode<synchronous>, transform_indices = @transform_6, window_bounds = array<i64: 16, 128>}, {pipeline_mode = #tpu.pipeline_mode<synchronous>, transform_indices = @transform_7, window_bounds = array<i64: 1, 128>}, {pipeline_mode = #tpu.pipeline_mode<synchronous>, transform_indices = @transform_8, window_bounds = array<i64: 8, 16>}, {pipeline_mode = #tpu.pipeline_mode<synchronous>, transform_indices = @transform_9, window_bounds = array<i64: 1, 16>}, {pipeline_mode = #tpu.pipeline_mode<synchronous>, transform_indices = @transform_10, window_bounds = array<i64: 16, 32>}, {pipeline_mode = #tpu.pipeline_mode<synchronous>, transform_indices = @transform_11, window_bounds = array<i64: 1, 32>}, {pipeline_mode = #tpu.pipeline_mode<synchronous>, transform_indices = @transform_12, window_bounds = array<i64: 32, 128>}, {pipeline_mode = #tpu.pipeline_mode<synchronous>, transform_indices = @transform_13, window_bounds = array<i64: 1, 128>}, {transform_indices = @transform_14, window_bounds = array<i64: 8, 128>}, {transform_indices = @transform_15, window_bounds = array<i64: 8, 128>}]} {
    %c0 = arith.constant 0 : index
    %c0_0 = arith.constant 0 : index
    %0 = vector.load %arg1[%c0, %c0_0] : memref<8x64xf32, #tpu.memory_space<vmem>>, vector<8x64xf32>
    %c0_1 = arith.constant 0 : index
    %c0_2 = arith.constant 0 : index
    %1 = vector.load %arg3[%c0_1, %c0_2] : memref<64x32xf32, #tpu.memory_space<vmem>>, vector<64x32xf32>
    %cst = arith.constant dense<0.000000e+00> : vector<8x32xf32>
    %2 = tpu.matmul %0, %1, %cst {dimension_numbers = #tpu.dot_dimension_numbers<[1], [0], [0], [1], [0, 0, 1, 1], [], []>} : vector<8x64xf32>, vector<64x32xf32>, vector<8x32xf32> -> vector<8x32xf32>
    %c0_3 = arith.constant 0 : index
    %c0_4 = arith.constant 0 : index
    %3 = vector.load %arg4[%c0_3, %c0_4] : memref<1x32xf32, #tpu.memory_space<vmem>>, vector<1x32xf32>
    %4 = vector.broadcast %3 : vector<1x32xf32> to vector<8x32xf32>
    %5 = arith.addf %2, %4 : vector<8x32xf32>
    %cst_5 = arith.constant 0.000000e+00 : f32
    %6 = vector.broadcast %cst_5 : f32 to vector<8x32xf32>
    %7 = arith.maximumf %5, %6 : vector<8x32xf32>
    %c0_6 = arith.constant 0 : index
    %c0_7 = arith.constant 0 : index
    %8 = vector.load %arg5[%c0_6, %c0_7] : memref<32x16xf32, #tpu.memory_space<vmem>>, vector<32x16xf32>
    %cst_8 = arith.constant dense<0.000000e+00> : vector<8x16xf32>
    %9 = tpu.matmul %7, %8, %cst_8 {dimension_numbers = #tpu.dot_dimension_numbers<[1], [0], [0], [1], [0, 0, 1, 1], [], []>} : vector<8x32xf32>, vector<32x16xf32>, vector<8x16xf32> -> vector<8x16xf32>
    %c0_9 = arith.constant 0 : index
    %c0_10 = arith.constant 0 : index
    %10 = vector.load %arg6[%c0_9, %c0_10] : memref<1x16xf32, #tpu.memory_space<vmem>>, vector<1x16xf32>
    %11 = vector.broadcast %10 : vector<1x16xf32> to vector<8x16xf32>
    %12 = arith.addf %9, %11 : vector<8x16xf32>
    %cst_11 = arith.constant 0.000000e+00 : f32
    %13 = vector.broadcast %cst_11 : f32 to vector<8x16xf32>
    %14 = arith.maximumf %12, %13 : vector<8x16xf32>
    %c0_12 = arith.constant 0 : index
    %c0_13 = arith.constant 0 : index
    %15 = vector.load %arg7[%c0_12, %c0_13] : memref<16x128xf32, #tpu.memory_space<vmem>>, vector<16x128xf32>
    %cst_14 = arith.constant dense<0.000000e+00> : vector<8x128xf32>
    %16 = tpu.matmul %14, %15, %cst_14 {dimension_numbers = #tpu.dot_dimension_numbers<[1], [0], [0], [1], [0, 0, 1, 1], [], []>} : vector<8x16xf32>, vector<16x128xf32>, vector<8x128xf32> -> vector<8x128xf32>
    %c0_15 = arith.constant 0 : index
    %c0_16 = arith.constant 0 : index
    %17 = vector.load %arg8[%c0_15, %c0_16] : memref<1x128xf32, #tpu.memory_space<vmem>>, vector<1x128xf32>
    %18 = vector.broadcast %17 : vector<1x128xf32> to vector<8x128xf32>
    %19 = arith.addf %16, %18 : vector<8x128xf32>
    %20 = vector.extract_strided_slice %19 {offsets = [0, 0], sizes = [8, 8], strides = [1, 1]} : vector<8x128xf32> to vector<8x8xf32>
    %21 = vector.extract_strided_slice %19 {offsets = [0, 8], sizes = [8, 8], strides = [1, 1]} : vector<8x128xf32> to vector<8x8xf32>
    %c0_17 = arith.constant 0 : index
    %c0_18 = arith.constant 0 : index
    %22 = vector.load %arg2[%c0_17, %c0_18] : memref<8x128xf32, #tpu.memory_space<vmem>>, vector<8x128xf32>
    %23 = vector.extract_strided_slice %22 {offsets = [0, 0], sizes = [8, 8], strides = [1, 1]} : vector<8x128xf32> to vector<8x8xf32>
    %cst_19 = arith.constant 5.000000e-01 : f32
    %24 = vector.broadcast %cst_19 : f32 to vector<8x8xf32>
    %25 = arith.mulf %24, %21 : vector<8x8xf32>
    %26 = math.exp %25 : vector<8x8xf32>
    %27 = arith.mulf %23, %26 : vector<8x8xf32>
    %28 = arith.addf %20, %27 : vector<8x8xf32>
    %c0_20 = arith.constant 0 : index
    %c0_21 = arith.constant 0 : index
    %29 = vector.load %arg9[%c0_20, %c0_21] : memref<8x16xf32, #tpu.memory_space<vmem>>, vector<8x16xf32>
    %cst_22 = arith.constant dense<0.000000e+00> : vector<8x16xf32>
    %30 = tpu.matmul %28, %29, %cst_22 {dimension_numbers = #tpu.dot_dimension_numbers<[1], [0], [0], [1], [0, 0, 1, 1], [], []>} : vector<8x8xf32>, vector<8x16xf32>, vector<8x16xf32> -> vector<8x16xf32>
    %c0_23 = arith.constant 0 : index
    %c0_24 = arith.constant 0 : index
    %31 = vector.load %arg10[%c0_23, %c0_24] : memref<1x16xf32, #tpu.memory_space<vmem>>, vector<1x16xf32>
    %32 = vector.broadcast %31 : vector<1x16xf32> to vector<8x16xf32>
    %33 = arith.addf %30, %32 : vector<8x16xf32>
    %cst_25 = arith.constant 0.000000e+00 : f32
    %34 = vector.broadcast %cst_25 : f32 to vector<8x16xf32>
    %35 = arith.maximumf %33, %34 : vector<8x16xf32>
    %c0_26 = arith.constant 0 : index
    %c0_27 = arith.constant 0 : index
    %36 = vector.load %arg11[%c0_26, %c0_27] : memref<16x32xf32, #tpu.memory_space<vmem>>, vector<16x32xf32>
    %cst_28 = arith.constant dense<0.000000e+00> : vector<8x32xf32>
    %37 = tpu.matmul %35, %36, %cst_28 {dimension_numbers = #tpu.dot_dimension_numbers<[1], [0], [0], [1], [0, 0, 1, 1], [], []>} : vector<8x16xf32>, vector<16x32xf32>, vector<8x32xf32> -> vector<8x32xf32>
    %c0_29 = arith.constant 0 : index
    %c0_30 = arith.constant 0 : index
    %38 = vector.load %arg12[%c0_29, %c0_30] : memref<1x32xf32, #tpu.memory_space<vmem>>, vector<1x32xf32>
    %39 = vector.broadcast %38 : vector<1x32xf32> to vector<8x32xf32>
    %40 = arith.addf %37, %39 : vector<8x32xf32>
    %cst_31 = arith.constant 0.000000e+00 : f32
    %41 = vector.broadcast %cst_31 : f32 to vector<8x32xf32>
    %42 = arith.maximumf %40, %41 : vector<8x32xf32>
    %c0_32 = arith.constant 0 : index
    %c0_33 = arith.constant 0 : index
    %43 = vector.load %arg13[%c0_32, %c0_33] : memref<32x128xf32, #tpu.memory_space<vmem>>, vector<32x128xf32>
    %cst_34 = arith.constant dense<0.000000e+00> : vector<8x128xf32>
    %44 = tpu.matmul %42, %43, %cst_34 {dimension_numbers = #tpu.dot_dimension_numbers<[1], [0], [0], [1], [0, 0, 1, 1], [], []>} : vector<8x32xf32>, vector<32x128xf32>, vector<8x128xf32> -> vector<8x128xf32>
    %c0_35 = arith.constant 0 : index
    %c0_36 = arith.constant 0 : index
    %45 = vector.load %arg14[%c0_35, %c0_36] : memref<1x128xf32, #tpu.memory_space<vmem>>, vector<1x128xf32>
    %46 = vector.broadcast %45 : vector<1x128xf32> to vector<8x128xf32>
    %47 = arith.addf %44, %46 : vector<8x128xf32>
    %c0_37 = arith.constant 0 : index
    %c0_38 = arith.constant 0 : index
    %48 = vector.load %arg15[%c0_37, %c0_38] : memref<8x128xf32, #tpu.memory_space<vmem>>, vector<8x128xf32>
    tpu.vector_store %arg15[%c0_37, %c0_38], %47 {strides = array<i32>} : memref<8x128xf32, #tpu.memory_space<vmem>>, vector<8x128xf32>,
    %c0_39 = arith.constant 0 : index
    %c0_40 = arith.constant 0 : index
    %49 = vector.load %arg16[%c0_39, %c0_40] : memref<8x128xf32, #tpu.memory_space<vmem>>, vector<8x128xf32>
    tpu.vector_store %arg16[%c0_39, %c0_40], %19 {strides = array<i32>} : memref<8x128xf32, #tpu.memory_space<vmem>>, vector<8x128xf32>,
    return
  }
  func.func @transform_0(%arg0: i32) -> (i32, i32) {
    %c0_i32 = arith.constant 0 : i32
    %c0_i32_0 = arith.constant 0 : i32
    return %arg0, %c0_i32 : i32, i32
  }
  func.func @transform_1(%arg0: i32) -> (i32, i32) {
    %c0_i32 = arith.constant 0 : i32
    %c0_i32_0 = arith.constant 0 : i32
    return %arg0, %c0_i32 : i32, i32
  }
  func.func @transform_2(%arg0: i32) -> (i32, i32) {
    %c0_i32 = arith.constant 0 : i32
    %c0_i32_0 = arith.constant 0 : i32
    %c0_i32_1 = arith.constant 0 : i32
    return %c0_i32, %c0_i32_0 : i32, i32
  }
  func.func @transform_3(%arg0: i32) -> (i32, i32) {
    %c0_i32 = arith.constant 0 : i32
    %c0_i32_0 = arith.constant 0 : i32
    %c0_i32_1 = arith.constant 0 : i32
    return %c0_i32, %c0_i32_0 : i32, i32
  }
  func.func @transform_4(%arg0: i32) -> (i32, i32) {
    %c0_i32 = arith.constant 0 : i32
    %c0_i32_0 = arith.constant 0 : i32
    %c0_i32_1 = arith.constant 0 : i32
    return %c0_i32, %c0_i32_0 : i32, i32
  }
  func.func @transform_5(%arg0: i32) -> (i32, i32) {
    %c0_i32 = arith.constant 0 : i32
    %c0_i32_0 = arith.constant 0 : i32
    %c0_i32_1 = arith.constant 0 : i32
    return %c0_i32, %c0_i32_0 : i32, i32
  }
  func.func @transform_6(%arg0: i32) -> (i32, i32) {
    %c0_i32 = arith.constant 0 : i32
    %c0_i32_0 = arith.constant 0 : i32
    %c0_i32_1 = arith.constant 0 : i32
    return %c0_i32, %c0_i32_0 : i32, i32
  }
  func.func @transform_7(%arg0: i32) -> (i32, i32) {
    %c0_i32 = arith.constant 0 : i32
    %c0_i32_0 = arith.constant 0 : i32
    %c0_i32_1 = arith.constant 0 : i32
    return %c0_i32, %c0_i32_0 : i32, i32
  }
  func.func @transform_8(%arg0: i32) -> (i32, i32) {
    %c0_i32 = arith.constant 0 : i32
    %c0_i32_0 = arith.constant 0 : i32
    %c0_i32_1 = arith.constant 0 : i32
    return %c0_i32, %c0_i32_0 : i32, i32
  }
  func.func @transform_9(%arg0: i32) -> (i32, i32) {
    %c0_i32 = arith.constant 0 : i32
    %c0_i32_0 = arith.constant 0 : i32
    %c0_i32_1 = arith.constant 0 : i32
    return %c0_i32, %c0_i32_0 : i32, i32
  }
  func.func @transform_10(%arg0: i32) -> (i32, i32) {
    %c0_i32 = arith.constant 0 : i32
    %c0_i32_0 = arith.constant 0 : i32
    %c0_i32_1 = arith.constant 0 : i32
    return %c0_i32, %c0_i32_0 : i32, i32
  }
  func.func @transform_11(%arg0: i32) -> (i32, i32) {
    %c0_i32 = arith.constant 0 : i32
    %c0_i32_0 = arith.constant 0 : i32
    %c0_i32_1 = arith.constant 0 : i32
    return %c0_i32, %c0_i32_0 : i32, i32
  }
  func.func @transform_12(%arg0: i32) -> (i32, i32) {
    %c0_i32 = arith.constant 0 : i32
    %c0_i32_0 = arith.constant 0 : i32
    %c0_i32_1 = arith.constant 0 : i32
    return %c0_i32, %c0_i32_0 : i32, i32
  }
  func.func @transform_13(%arg0: i32) -> (i32, i32) {
    %c0_i32 = arith.constant 0 : i32
    %c0_i32_0 = arith.constant 0 : i32
    %c0_i32_1 = arith.constant 0 : i32
    return %c0_i32, %c0_i32_0 : i32, i32
  }
  func.func @transform_14(%arg0: i32) -> (i32, i32) {
    %c0_i32 = arith.constant 0 : i32
    %c0_i32_0 = arith.constant 0 : i32
    return %arg0, %c0_i32 : i32, i32
  }
  func.func @transform_15(%arg0: i32) -> (i32, i32) {
    %c0_i32 = arith.constant 0 : i32
    %c0_i32_0 = arith.constant 0 : i32
    return %arg0, %c0_i32 : i32, i32
  }
}

module attributes {stable_mosaic.version = 11 : i64} {
  func.func @vae_kernel(%arg0: i32, %arg1: memref<8x64xf32, #tpu.memory_space<vmem>>, %arg2: memref<8x128xf32, #tpu.memory_space<vmem>>, %arg3: memref<64x32xf32, #tpu.memory_space<vmem>>, %arg4: memref<1x32xf32, #tpu.memory_space<vmem>>, %arg5: memref<32x16xf32, #tpu.memory_space<vmem>>, %arg6: memref<1x16xf32, #tpu.memory_space<vmem>>, %arg7: memref<16x128xf32, #tpu.memory_space<vmem>>, %arg8: memref<1x128xf32, #tpu.memory_space<vmem>>, %arg9: memref<8x16xf32, #tpu.memory_space<vmem>>, %arg10: memref<1x16xf32, #tpu.memory_space<vmem>>, %arg11: memref<16x32xf32, #tpu.memory_space<vmem>>, %arg12: memref<1x32xf32, #tpu.memory_space<vmem>>, %arg13: memref<32x128xf32, #tpu.memory_space<vmem>>, %arg14: memref<1x128xf32, #tpu.memory_space<vmem>>, %arg15: memref<8x128xf32, #tpu.memory_space<vmem>>, %arg16: memref<8x128xf32, #tpu.memory_space<vmem>>) attributes {dimension_semantics = [#tpu.dimension_semantics<parallel>], iteration_bounds = array<i64: 1>, scalar_prefetch = 0 : i64, scratch_operands = 0 : i64, tpu.core_type = #tpu.core_type<tc>, window_params = [{transform_indices = @transform_0, window_bounds = array<i64: 8, 64>}, {transform_indices = @transform_1, window_bounds = array<i64: 8, 128>}, {pipeline_mode = #tpu.pipeline_mode<synchronous>, transform_indices = @transform_2, window_bounds = array<i64: 64, 32>}, {pipeline_mode = #tpu.pipeline_mode<synchronous>, transform_indices = @transform_3, window_bounds = array<i64: 1, 32>}, {pipeline_mode = #tpu.pipeline_mode<synchronous>, transform_indices = @transform_4, window_bounds = array<i64: 32, 16>}, {pipeline_mode = #tpu.pipeline_mode<synchronous>, transform_indices = @transform_5, window_bounds = array<i64: 1, 16>}, {pipeline_mode = #tpu.pipeline_mode<synchronous>, transform_indices = @transform_6, window_bounds = array<i64: 16, 128>}, {pipeline_mode = #tpu.pipeline_mode<synchronous>, transform_indices = @transform_7, window_bounds = array<i64: 1, 128>}, {pipeline_mode = #tpu.pipeline_mode<synchronous>, transform_indices = @transform_8, window_bounds = array<i64: 8, 16>}, {pipeline_mode = #tpu.pipeline_mode<synchronous>, transform_indices = @transform_9, window_bounds = array<i64: 1, 16>}, {pipeline_mode = #tpu.pipeline_mode<synchronous>, transform_indices = @transform_10, window_bounds = array<i64: 16, 32>}, {pipeline_mode = #tpu.pipeline_mode<synchronous>, transform_indices = @transform_11, window_bounds = array<i64: 1, 32>}, {pipeline_mode = #tpu.pipeline_mode<synchronous>, transform_indices = @transform_12, window_bounds = array<i64: 32, 128>}, {pipeline_mode = #tpu.pipeline_mode<synchronous>, transform_indices = @transform_13, window_bounds = array<i64: 1, 128>}, {transform_indices = @transform_14, window_bounds = array<i64: 8, 128>}, {transform_indices = @transform_15, window_bounds = array<i64: 8, 128>}]} {
    %c0 = arith.constant 0 : index
    %c0_0 = arith.constant 0 : index
    %0 = vector.load %arg1[%c0, %c0_0] : memref<8x64xf32, #tpu.memory_space<vmem>>, vector<8x64xf32>
    %c0_1 = arith.constant 0 : index
    %c0_2 = arith.constant 0 : index
    %1 = vector.load %arg3[%c0_1, %c0_2] : memref<64x32xf32, #tpu.memory_space<vmem>>, vector<64x32xf32>
    %cst = arith.constant dense<0.000000e+00> : vector<8x32xf32>
    %2 = tpu.matmul %0, %1, %cst {dimension_numbers = #tpu.dot_dimension_numbers<[1], [0], [0], [1], [0, 0, 1, 1], [], []>} : vector<8x64xf32>, vector<64x32xf32>, vector<8x32xf32> -> vector<8x32xf32>
    %c0_3 = arith.constant 0 : index
    %c0_4 = arith.constant 0 : index
    %3 = vector.load %arg4[%c0_3, %c0_4] : memref<1x32xf32, #tpu.memory_space<vmem>>, vector<1x32xf32>
    %4 = vector.broadcast %3 : vector<1x32xf32> to vector<8x32xf32>
    %5 = arith.addf %2, %4 : vector<8x32xf32>
    %cst_5 = arith.constant 0.000000e+00 : f32
    %6 = vector.broadcast %cst_5 : f32 to vector<8x32xf32>
    %7 = arith.maximumf %5, %6 : vector<8x32xf32>
    %c0_6 = arith.constant 0 : index
    %c0_7 = arith.constant 0 : index
    %8 = vector.load %arg5[%c0_6, %c0_7] : memref<32x16xf32, #tpu.memory_space<vmem>>, vector<32x16xf32>
    %cst_8 = arith.constant dense<0.000000e+00> : vector<8x16xf32>
    %9 = tpu.matmul %7, %8, %cst_8 {dimension_numbers = #tpu.dot_dimension_numbers<[1], [0], [0], [1], [0, 0, 1, 1], [], []>} : vector<8x32xf32>, vector<32x16xf32>, vector<8x16xf32> -> vector<8x16xf32>
    %c0_9 = arith.constant 0 : index
    %c0_10 = arith.constant 0 : index
    %10 = vector.load %arg6[%c0_9, %c0_10] : memref<1x16xf32, #tpu.memory_space<vmem>>, vector<1x16xf32>
    %11 = vector.broadcast %10 : vector<1x16xf32> to vector<8x16xf32>
    %12 = arith.addf %9, %11 : vector<8x16xf32>
    %cst_11 = arith.constant 0.000000e+00 : f32
    %13 = vector.broadcast %cst_11 : f32 to vector<8x16xf32>
    %14 = arith.maximumf %12, %13 : vector<8x16xf32>
    %c0_12 = arith.constant 0 : index
    %c0_13 = arith.constant 0 : index
    %15 = vector.load %arg7[%c0_12, %c0_13] : memref<16x128xf32, #tpu.memory_space<vmem>>, vector<16x128xf32>
    %cst_14 = arith.constant dense<0.000000e+00> : vector<8x128xf32>
    %16 = tpu.matmul %14, %15, %cst_14 {dimension_numbers = #tpu.dot_dimension_numbers<[1], [0], [0], [1], [0, 0, 1, 1], [], []>} : vector<8x16xf32>, vector<16x128xf32>, vector<8x128xf32> -> vector<8x128xf32>
    %c0_15 = arith.constant 0 : index
    %c0_16 = arith.constant 0 : index
    %17 = vector.load %arg8[%c0_15, %c0_16] : memref<1x128xf32, #tpu.memory_space<vmem>>, vector<1x128xf32>
    %18 = vector.broadcast %17 : vector<1x128xf32> to vector<8x128xf32>
    %19 = arith.addf %16, %18 : vector<8x128xf32>
    %20 = vector.extract_strided_slice %19 {offsets = [0, 0], sizes = [8, 8], strides = [1, 1]} : vector<8x128xf32> to vector<8x8xf32>
    %21 = vector.extract_strided_slice %19 {offsets = [0, 8], sizes = [8, 8], strides = [1, 1]} : vector<8x128xf32> to vector<8x8xf32>
    %c0_17 = arith.constant 0 : index
    %c0_18 = arith.constant 0 : index
    %22 = vector.load %arg2[%c0_17, %c0_18] : memref<8x128xf32, #tpu.memory_space<vmem>>, vector<8x128xf32>
    %23 = vector.extract_strided_slice %22 {offsets = [0, 0], sizes = [8, 8], strides = [1, 1]} : vector<8x128xf32> to vector<8x8xf32>
    %cst_19 = arith.constant 5.000000e-01 : f32
    %24 = vector.broadcast %cst_19 : f32 to vector<8x8xf32>
    %25 = arith.mulf %24, %21 : vector<8x8xf32>
    %26 = math.exp %25 : vector<8x8xf32>
    %27 = arith.mulf %23, %26 : vector<8x8xf32>
    %28 = arith.addf %20, %27 : vector<8x8xf32>
    %c0_20 = arith.constant 0 : index
    %c0_21 = arith.constant 0 : index
    %29 = vector.load %arg9[%c0_20, %c0_21] : memref<8x16xf32, #tpu.memory_space<vmem>>, vector<8x16xf32>
    %cst_22 = arith.constant dense<0.000000e+00> : vector<8x16xf32>
    %30 = tpu.matmul %28, %29, %cst_22 {dimension_numbers = #tpu.dot_dimension_numbers<[1], [0], [0], [1], [0, 0, 1, 1], [], []>} : vector<8x8xf32>, vector<8x16xf32>, vector<8x16xf32> -> vector<8x16xf32>
    %c0_23 = arith.constant 0 : index
    %c0_24 = arith.constant 0 : index
    %31 = vector.load %arg10[%c0_23, %c0_24] : memref<1x16xf32, #tpu.memory_space<vmem>>, vector<1x16xf32>
    %32 = vector.broadcast %31 : vector<1x16xf32> to vector<8x16xf32>
    %33 = arith.addf %30, %32 : vector<8x16xf32>
    %cst_25 = arith.constant 0.000000e+00 : f32
    %34 = vector.broadcast %cst_25 : f32 to vector<8x16xf32>
    %35 = arith.maximumf %33, %34 : vector<8x16xf32>
    %c0_26 = arith.constant 0 : index
    %c0_27 = arith.constant 0 : index
    %36 = vector.load %arg11[%c0_26, %c0_27] : memref<16x32xf32, #tpu.memory_space<vmem>>, vector<16x32xf32>
    %cst_28 = arith.constant dense<0.000000e+00> : vector<8x32xf32>
    %37 = tpu.matmul %35, %36, %cst_28 {dimension_numbers = #tpu.dot_dimension_numbers<[1], [0], [0], [1], [0, 0, 1, 1], [], []>} : vector<8x16xf32>, vector<16x32xf32>, vector<8x32xf32> -> vector<8x32xf32>
    %c0_29 = arith.constant 0 : index
    %c0_30 = arith.constant 0 : index
    %38 = vector.load %arg12[%c0_29, %c0_30] : memref<1x32xf32, #tpu.memory_space<vmem>>, vector<1x32xf32>
    %39 = vector.broadcast %38 : vector<1x32xf32> to vector<8x32xf32>
    %40 = arith.addf %37, %39 : vector<8x32xf32>
    %cst_31 = arith.constant 0.000000e+00 : f32
    %41 = vector.broadcast %cst_31 : f32 to vector<8x32xf32>
    %42 = arith.maximumf %40, %41 : vector<8x32xf32>
    %c0_32 = arith.constant 0 : index
    %c0_33 = arith.constant 0 : index
    %43 = vector.load %arg13[%c0_32, %c0_33] : memref<32x128xf32, #tpu.memory_space<vmem>>, vector<32x128xf32>
    %cst_34 = arith.constant dense<0.000000e+00> : vector<8x128xf32>
    %44 = tpu.matmul %42, %43, %cst_34 {dimension_numbers = #tpu.dot_dimension_numbers<[1], [0], [0], [1], [0, 0, 1, 1], [], []>} : vector<8x32xf32>, vector<32x128xf32>, vector<8x128xf32> -> vector<8x128xf32>
    %c0_35 = arith.constant 0 : index
    %c0_36 = arith.constant 0 : index
    %45 = vector.load %arg14[%c0_35, %c0_36] : memref<1x128xf32, #tpu.memory_space<vmem>>, vector<1x128xf32>
    %46 = vector.broadcast %45 : vector<1x128xf32> to vector<8x128xf32>
    %47 = arith.addf %44, %46 : vector<8x128xf32>
    %c0_37 = arith.constant 0 : index
    %c0_38 = arith.constant 0 : index
    %48 = vector.load %arg15[%c0_37, %c0_38] : memref<8x128xf32, #tpu.memory_space<vmem>>, vector<8x128xf32>
    tpu.vector_store %arg15[%c0_37, %c0_38], %47 {strides = array<i32>} : memref<8x128xf32, #tpu.memory_space<vmem>>, vector<8x128xf32>,
    %c0_39 = arith.constant 0 : index
    %c0_40 = arith.constant 0 : index
    %49 = vector.load %arg16[%c0_39, %c0_40] : memref<8x128xf32, #tpu.memory_space<vmem>>, vector<8x128xf32>
    tpu.vector_store %arg16[%c0_39, %c0_40], %19 {strides = array<i32>} : memref<8x128xf32, #tpu.memory_space<vmem>>, vector<8x128xf32>,
    return
  }
  func.func @transform_0(%arg0: i32) -> (i32, i32) {
    %c0_i32 = arith.constant 0 : i32
    %c0_i32_0 = arith.constant 0 : i32
    return %arg0, %c0_i32 : i32, i32
  }
  func.func @transform_1(%arg0: i32) -> (i32, i32) {
    %c0_i32 = arith.constant 0 : i32
    %c0_i32_0 = arith.constant 0 : i32
    return %arg0, %c0_i32 : i32, i32
  }
  func.func @transform_2(%arg0: i32) -> (i32, i32) {
    %c0_i32 = arith.constant 0 : i32
    %c0_i32_0 = arith.constant 0 : i32
    %c0_i32_1 = arith.constant 0 : i32
    return %c0_i32, %c0_i32_0 : i32, i32
  }
  func.func @transform_3(%arg0: i32) -> (i32, i32) {
    %c0_i32 = arith.constant 0 : i32
    %c0_i32_0 = arith.constant 0 : i32
    %c0_i32_1 = arith.constant 0 : i32
    return %c0_i32, %c0_i32_0 : i32, i32
  }
  func.func @transform_4(%arg0: i32) -> (i32, i32) {
    %c0_i32 = arith.constant 0 : i32
    %c0_i32_0 = arith.constant 0 : i32
    %c0_i32_1 = arith.constant 0 : i32
    return %c0_i32, %c0_i32_0 : i32, i32
  }
  func.func @transform_5(%arg0: i32) -> (i32, i32) {
    %c0_i32 = arith.constant 0 : i32
    %c0_i32_0 = arith.constant 0 : i32
    %c0_i32_1 = arith.constant 0 : i32
    return %c0_i32, %c0_i32_0 : i32, i32
  }
  func.func @transform_6(%arg0: i32) -> (i32, i32) {
    %c0_i32 = arith.constant 0 : i32
    %c0_i32_0 = arith.constant 0 : i32
    %c0_i32_1 = arith.constant 0 : i32
    return %c0_i32, %c0_i32_0 : i32, i32
  }
  func.func @transform_7(%arg0: i32) -> (i32, i32) {
    %c0_i32 = arith.constant 0 : i32
    %c0_i32_0 = arith.constant 0 : i32
    %c0_i32_1 = arith.constant 0 : i32
    return %c0_i32, %c0_i32_0 : i32, i32
  }
  func.func @transform_8(%arg0: i32) -> (i32, i32) {
    %c0_i32 = arith.constant 0 : i32
    %c0_i32_0 = arith.constant 0 : i32
    %c0_i32_1 = arith.constant 0 : i32
    return %c0_i32, %c0_i32_0 : i32, i32
  }
  func.func @transform_9(%arg0: i32) -> (i32, i32) {
    %c0_i32 = arith.constant 0 : i32
    %c0_i32_0 = arith.constant 0 : i32
    %c0_i32_1 = arith.constant 0 : i32
    return %c0_i32, %c0_i32_0 : i32, i32
  }
  func.func @transform_10(%arg0: i32) -> (i32, i32) {
    %c0_i32 = arith.constant 0 : i32
    %c0_i32_0 = arith.constant 0 : i32
    %c0_i32_1 = arith.constant 0 : i32
    return %c0_i32, %c0_i32_0 : i32, i32
  }
  func.func @transform_11(%arg0: i32) -> (i32, i32) {
    %c0_i32 = arith.constant 0 : i32
    %c0_i32_0 = arith.constant 0 : i32
    %c0_i32_1 = arith.constant 0 : i32
    return %c0_i32, %c0_i32_0 : i32, i32
  }
  func.func @transform_12(%arg0: i32) -> (i32, i32) {
    %c0_i32 = arith.constant 0 : i32
    %c0_i32_0 = arith.constant 0 : i32
    %c0_i32_1 = arith.constant 0 : i32
    return %c0_i32, %c0_i32_0 : i32, i32
  }
  func.func @transform_13(%arg0: i32) -> (i32, i32) {
    %c0_i32 = arith.constant 0 : i32
    %c0_i32_0 = arith.constant 0 : i32
    %c0_i32_1 = arith.constant 0 : i32
    return %c0_i32, %c0_i32_0 : i32, i32
  }
  func.func @transform_14(%arg0: i32) -> (i32, i32) {
    %c0_i32 = arith.constant 0 : i32
    %c0_i32_0 = arith.constant 0 : i32
    return %arg0, %c0_i32 : i32, i32
  }
  func.func @transform_15(%arg0: i32) -> (i32, i32) {
    %c0_i32 = arith.constant 0 : i32
    %c0_i32_0 = arith.constant 0 : i32
    return %arg0, %c0_i32 : i32, i32
  }
}

</mosaic_0001>

<bundles_post_ra>
// kernel: tpu_custom_call.1
= control target key start
LH: loop header
LB: loop body
LE: loop exit
PB: predicated region body
PF: predicated region fallthrough
CT: control target
= control target key end

     0   :  { %21 = vsyncpa [#allocation3], 0  ;;  %v786_v3 = vmov 0.0|0.0   ;;  %vm787_vm0 = vmmov 0   ;;  %v788_v6 = vmov 0.0   ;;  %s1010_s0 = inlined_call_operand.vmem [shape: f32[8,64], index: 0, kind: input, shape index: {}]   ;;  %s1011_s1 = inlined_call_operand.vmem [shape: f32[8,128], index: 1, kind: input, shape index: {}]   ;;  %s1012_s2 = inlined_call_operand.vmem [shape: f32[64,32], index: 2, kind: input, shape index: {}]   ;;  %s1013_s3 = inlined_call_operand.vmem [shape: f32[1,32], index: 3, kind: input, shape index: {}]   ;;  %s1014_s4 = inlined_call_operand.vmem [shape: f32[32,16], index: 4, kind: input, shape index: {}]   ;;  %s1015_s5 = inlined_call_operand.vmem [shape: f32[1,16], index: 5, kind: input, shape index: {}]   ;;  %s1016_s6 = inlined_call_operand.vmem [shape: f32[16,128], index: 6, kind: input, shape index: {}]   ;;  %s1017_s7 = inlined_call_operand.vmem [shape: f32[1,128], index: 7, kind: input, shape index: {}]   ;;  %s1018_s8 = inlined_call_operand.vmem [shape: f32[8,16], index: 8, kind: input, shape index: {}]   ;;  %s1019_s9 = inlined_call_operand.vmem [shape: f32[1,16], index: 9, kind: input, shape index: {}]   ;;  %s1020_s10 = inlined_call_operand.vmem [shape: f32[16,32], index: 10, kind: input, shape index: {}]   ;;  %s1021_s11 = inlined_call_operand.vmem [shape: f32[1,32], index: 11, kind: input, shape index: {}]   ;;  %s1022_s12 = inlined_call_operand.vmem [shape: f32[32,128], index: 12, kind: input, shape index: {}]   ;;  %s1023_s13 = inlined_call_operand.vmem [shape: f32[1,128], index: 13, kind: input, shape index: {}]   ;;  %s1024_s14 = inlined_call_operand.hbm [shape: f32[8,128], index: 14, kind: output, shape index: {0}]   ;;  %s1025_s15 = inlined_call_operand.hbm [shape: f32[8,128], index: 15, kind: output, shape index: {1}]  }
   0x1   :  { %v52_v0 = vld [vmem:[%s1012_s2] sm:$0xff]  ;;  %v53_v1 = vld [vmem:[%s1012_s2 + $0x8] sm:$0xff]  ;;  %v54_v2 = vld [vmem:[%s1012_s2 + $0x10] sm:$0xff]  ;;  %700 = vmatprep.subr.bf16.mxu0 %v786_v3  ;;  %656 = vmatprep.mubr.msk.f32.mxu0 %vm787_vm0, %v788_v6 }
   0x2   :  { %v701_v4 = vpack.c.bf16 %v53_v1, %v52_v0  ;;  %v55_v5 = vld [vmem:[%s1012_s2 + $0x18] sm:$0xff]  ;;  %712 = vmatprep.subr.bf16.mxu1 %v786_v3  ;;  %667 = vmatprep.mubr.msk.f32.mxu1 %vm787_vm0, %v788_v6  ;;  %v142_v8 = vld [vmem:[%s1014_s4] sm:$0xff]  ;;  %v143_v9 = vld [vmem:[%s1014_s4 + $0x8] sm:$0xff] }
   0x3   :  { %v704_v7 = vpack.c.bf16 %v55_v5, %v54_v2  ;;  %v56_v10 = vld [vmem:[%s1012_s2 + $0x20] sm:$0xff]  ;;  %v57_v11 = vld [vmem:[%s1012_s2 + $0x28] sm:$0xff]  ;;  %v713_v12 = vpack.c.bf16 %v143_v9, %v142_v8 }
   0x4   :  { %702 = vmatpush3.bf16.msra.mxu0 %v701_v4 }
   0x5   :  { %703 = vmatprep.subr.bf16.mxu0 %v786_v3 }
   0x6   :  { %22 = vsyncpa [#allocation5], 0  ;;  %714 = vmatpush3.bf16.msra.mxu1 %v713_v12  ;;  %v707_v13 = vpack.c.bf16 %v57_v11, %v56_v10  ;;  %v58_v14 = vld [vmem:[%s1012_s2 + $0x30] sm:$0xff]  ;;  %v59_v15 = vld [vmem:[%s1012_s2 + $0x38] sm:$0xff]  ;;  %vm67_vm1 = vcmask 523264   ;;  %vm153_vm2 = vcmask 261120  }
   0x7   :  { %715 = vmatprep.subr.bf16.mxu1 %v786_v3  ;;  %v710_v16 = vpack.c.bf16 %v59_v15, %v58_v14  ;;  %v51_v17 = vld [vmem:[%s1010_s0] sm:$0xff]  ;;  %v144_v18 = vld [vmem:[%s1014_s4 + $0x10] sm:$0xff]  ;;  %v145_v19 = vld [vmem:[%s1014_s4 + $0x18] sm:$0xff]  ;;  %vm237_vm3 = vcmask 130048   ;;  %s789_s20 = smov 120   ;;  %vm329_vm4 = vcmask 64512  }
   0x8   :  { %705 = vmatpush3.bf16.msra.mxu0 %v704_v7  ;;  %v716_v20 = vpack.c.bf16 %v145_v19, %v144_v18  ;;  %v601_v21 = vld [vmem:[%s1013_s3] ss:$0 sm:$0xff]  ;;  %v229_v27 = vld [vmem:[%s1016_s6 + $0x8] sm:$0xff]  ;;  %v489_v57 = vld [vmem:[%s1022_s12 + $0x10] sm:$0xff] }
   0x9   :  { %706 = vmatprep.subr.bf16.mxu0 %v786_v3  ;;  %v228_v26 = vld [vmem:[%s1016_s6] sm:$0xff]  ;;  %v405_v47 = vld [vmem:[%s1020_s10 + $0x8] sm:$0xff]  ;;  %v490_v58 = vld [vmem:[%s1022_s12 + $0x18] sm:$0xff] }
   0xa   :  { %717 = vmatpush3.bf16.msra.mxu1 %v716_v20  ;;  %v719_v28 = vpack.c.bf16 %v229_v27, %v228_v26  ;;  %v603_v29 = vld [vmem:[%s1015_s5] ss:$0 sm:$0xff]  ;;  %v488_v50 = vld [vmem:[%s1022_s12 + $0x8] sm:$0xff]  ;;  %v728_v59 = vpack.c.bf16 %v490_v58, %v489_v57 }
   0xb   :  { %718 = vmatprep.subr.bf16.mxu1 %v786_v3  ;;  %v605_v34 = vld [vmem:[%s1017_s7] ss:$0 sm:$0xff] }
   0xc   :  { %708 = vmatpush3.bf16.msra.mxu0 %v707_v13  ;;  %v321_v40 = vld [vmem:[%s1018_s8] sm:$0xff] }
   0xd   :  { %709 = vmatprep.subr.bf16.mxu0 %v786_v3  ;;  %v311_v42 = vld [vmem:[%s1011_s1] sm:$0xff] }
   0xe   :  { %v404_v46 = vld [vmem:[%s1020_s10] sm:$0xff] }
   0xf   :  { %v722_v48 = vpack.c.bf16 %v405_v47, %v404_v46  ;;  %v487_v49 = vld [vmem:[%s1022_s12] sm:$0xff] }
  0x10   :  { %711 = vmatpush3.bf16.msra.mxu0 %v710_v16  ;;  %v725_v51 = vpack.c.bf16 %v488_v50, %v487_v49  ;;  %v607_v52 = vld [vmem:[%s1019_s9] ss:$0 sm:$0xff]  ;;  %s790_s9 = smov [#allocation4]  }
  0x11   :  { %721 = vmatprep.subr.bf16.mxu0 %v786_v3  ;;  %v609_v60 = vld [vmem:[%s1021_s11] ss:$0 sm:$0xff]  ;;  %s589_s3 = sshll.u32 %s790_s9, 4  ;;  %s590_s3 = int_to_ptr.vmem [resolvable:$true] %s589_s3 }
  0x12   :  { %s738_s17 = scalar_lea.vmem %s590_s3, 128  ;;  %p743_p1 = scmp.lt.s32.totalorder %s590_s3, %s590_s3 }
  0x13   :  { %657 = vmatmul.mubr.msk.f32.vlgmr.msra.gmra.mrb[0].mxu0 %vm67_vm1, %v51_v17  ;;  %p739_p0 = scmp.ne.s32.totalorder %s590_s3, %s738_s17  ;;  %p744_p2 = scmp.lt.s32.totalorder %s738_s17, %s738_s17 }
  0x14   :  { %686 = vmatprep.mubr.msk.f32.mxu0 %vm787_vm0, %v788_v6  ;;  %723 = vmatpush3.bf16.msra.mxu0 %v722_v48 }
  0x15   :  { %p745_p3 = por %p744_p2, %p743_p1 }
  0x17   :  { %p746_p4 = pnand %p745_p3, %p739_p0 }
  0xe6   :  { %v137_v22 = vpop.f32.mrb[0].mxu0 }
  0xe7   :  { %v138_v23 = vadd.f32 %v601_v21, %v137_v22  ;;  %v658_v24 = vpop.f32.mrb[1].mxu0 }
  0xe9   :  { %v141_v25 = vmax.f32 %v138_v23, 0.0 }
  0xeb   :  { %668 = vmatmul.mubr.msk.f32.vlgmr.msra.gmra.mrb[0].mxu1 %vm153_vm2, %v141_v25 }
  0xec   :  { %674 = vmatprep.mubr.msk.f32.mxu1 %vm787_vm0, %v788_v6  ;;  %720 = vmatpush3.bf16.msra.mxu1 %v719_v28 }
  0xed   :  { %677 = vmatprep.subr.mxu1 %v788_v6 }
 0x1be   :  { %v223_v30 = vpop.f32.mrb[0].mxu1 }
 0x1bf   :  { %v224_v31 = vadd.f32 %v603_v29, %v223_v30  ;;  %v669_v32 = vpop.f32.mrb[1].mxu1 }
 0x1c1   :  { %v227_v33 = vmax.f32 %v224_v31, 0.0 }
 0x1c3   :  { %675 = vmatmul.mubr.msk.f32.vlgmr.msra.gmra.mrb[2].mxu1 %vm237_vm3, %v227_v33 }
 0x1c4   :  { %679 = vmatprep.mubr.msk.f32.mxu1 %vm787_vm0, %v788_v6  ;;  %678 = vmatpush3.msra.mxu1 %v321_v40 }
 0x1c5   :  { %724 = vmatprep.subr.bf16.mxu1 %v786_v3 }
 0x296   :  { %v307_v35 = vpop.f32.mrb[2].mxu1 }
 0x297   :  { %v308_v36 = vadd.f32 %v605_v34, %v307_v35  ;;  %v676_v37 = vpop.f32.mrb[3].mxu1 }
 0x299   :  { %v312_v38 = vmul.f32 0.5, %v308_v36  ;;  %572 = vst [vmem:[#allocation4] sm:$0xff] %v308_v36 }
 0x29b   :  { %v313_v39 = vmul.f32 1.442695, %v312_v38 }
 0x29d   :  { %736 = vpow2.f32 %v313_v39 }
 0x2a7   :  { %v737_v41 = vpop.eup %736 }
 0x2a8   :  { %316 = vrot.lane.b32.xlu0 %v737_v41, %s789_s20 }
 0x31a   :  { %v317_v43 = vpop.permute.xlu0 %316 }
 0x31b   :  { %v319_v44 = vmul.f32 %v317_v43, %v311_v42 }
 0x31d   :  { %v320_v45 = vadd.f32 %v319_v44, %v308_v36 }
 0x31f   :  { %680 = vmatmul.mubr.msk.f32.vlgmr.msra.gmra.mrb[4].mxu1 %vm329_vm4, %v320_v45 }
 0x320   :  { %697 = vmatprep.mubr.msk.f32.mxu1 %vm787_vm0, %v788_v6  ;;  %726 = vmatpush3.bf16.msra.mxu1 %v725_v51 }
 0x321   :  { %727 = vmatprep.subr.bf16.mxu1 %v786_v3 }
 0x324   :  { %729 = vmatpush3.bf16.msra.mxu1 %v728_v59 }
 0x3f2   :  { %v399_v53 = vpop.f32.mrb[4].mxu1 }
 0x3f3   :  { %v400_v54 = vadd.f32 %v607_v52, %v399_v53  ;;  %v681_v55 = vpop.f32.mrb[5].mxu1 }
 0x3f5   :  { %v403_v56 = vmax.f32 %v400_v54, 0.0 }
 0x3f7   :  { %687 = vmatmul.mubr.msk.f32.vlgmr.msra.gmra.mrb[2].mxu0 %vm237_vm3, %v403_v56 }
 0x4ca   :  { %v482_v61 = vpop.f32.mrb[2].mxu0 }
 0x4cb   :  { %v483_v62 = vadd.f32 %v609_v60, %v482_v61  ;;  %v688_v63 = vpop.f32.mrb[3].mxu0 }
 0x4cd   :  { %v486_v0 = vmax.f32 %v483_v62, 0.0 }
 0x4cf   :  { %698 = vmatmul.mubr.msk.f32.vlgmr.msra.gmra.mrb[6].mxu1 %vm153_vm2, %v486_v0 }
 0x4d0   :  { %749 = shalt.err (!%p746_p4)
}
 0x4d1   :  { %s750_s11 = scalar_lea.hbm %s1025_s15, 128 }
 0x4d2   :  { %p751_p5 = scmp.ne.s32.totalorder %s1025_s15, %s750_s11  ;;  %p754_p6 = scmp.lt.u32.totalorder %s750_s11, %s1025_s15 }
 0x4d4   :  { %p756_p7 = pnand %p754_p6, %p751_p5 }
 0x4d6   :  { %759 = shalt.err (!%p756_p7)
}
 0x4d7   :  { %592 = dma.vmem_to_hbm [thread:$0]  %s590_s3, 128, %s1025_s15, [#allocation5]   ;;  %v611_v1 = vld [vmem:[%s1023_s13] ss:$0 sm:$0xff] }
 0x4d8   :  { %s791_s23 = smov [#allocation2]  }
 0x4d9   :  { %s579_s24 = sshll.u32 %s791_s23, 4  ;;  %s580_s24 = int_to_ptr.vmem [resolvable:$true] %s579_s24 }
 0x4da   :  { %s760_s25 = scalar_lea.vmem %s580_s24, 128  ;;  %p765_p9 = scmp.lt.s32.totalorder %s580_s24, %s580_s24 }
 0x4db   :  { %p761_p8 = scmp.ne.s32.totalorder %s580_s24, %s760_s25  ;;  %p766_p10 = scmp.lt.s32.totalorder %s760_s25, %s760_s25 }
 0x4dd   :  { %p767_p11 = por %p766_p10, %p765_p9 }
 0x4df   :  { %p768_p12 = pnand %p767_p11, %p761_p8 }
 0x5a2   :  { %v567_v2 = vpop.f32.mrb[6].mxu1 }
 0x5a3   :  { %v568_v3 = vadd.f32 %v611_v1, %v567_v2  ;;  %v699_v4 = vpop.f32.mrb[7].mxu1 }
 0x5a5   :  { %571 = vst [vmem:[#allocation2] sm:$0xff] %v568_v3 }
 0x5a6   :  { %771 = shalt.err (!%p768_p12)
}
 0x5a7   :  { %s772_s26 = scalar_lea.hbm %s1024_s14, 128 }
 0x5a8   :  { %p773_p13 = scmp.ne.s32.totalorder %s1024_s14, %s772_s26  ;;  %p776_p0 = scmp.lt.u32.totalorder %s772_s26, %s1024_s14 }
 0x5aa   :  { %p778_p1 = pnand %p776_p0, %p773_p13 }
 0x5ac   :  { %781 = shalt.err (!%p778_p1)
}
 0x5ad   :  { %582 = dma.vmem_to_hbm [thread:$0]  %s580_s24, 128, %s1024_s14, [#allocation3]  }
 0x5ae   :  { %782 = dma.done.wait [#allocation3], 128  }
 0x5af   :  { %783 = vsyncadd [#allocation3], 4294967168 }
 0x5b0   :  { %784 = dma.done.wait [#allocation5], 128  }
 0x5b1   :  { %785 = vsyncadd [#allocation5], 4294967168 }
 0x5b2   :  { %599 = vsyncpa [#allocation3], 1 }
 0x5b3   :  { %600 = vsyncpa [#allocation5], 1 }

// kernel: tpu_custom_call.1
= control target key start
LH: loop header
LB: loop body
LE: loop exit
PB: predicated region body
PF: predicated region fallthrough
CT: control target
= control target key end

     0   :  { %21 = vsyncpa [#allocation3], 0  ;;  %v786_v3 = vmov 0.0|0.0   ;;  %vm787_vm0 = vmmov 0   ;;  %v788_v6 = vmov 0.0   ;;  %s1010_s0 = inlined_call_operand.vmem [shape: f32[8,64], index: 0, kind: input, shape index: {}]   ;;  %s1011_s1 = inlined_call_operand.vmem [shape: f32[8,128], index: 1, kind: input, shape index: {}]   ;;  %s1012_s2 = inlined_call_operand.vmem [shape: f32[64,32], index: 2, kind: input, shape index: {}]   ;;  %s1013_s3 = inlined_call_operand.vmem [shape: f32[1,32], index: 3, kind: input, shape index: {}]   ;;  %s1014_s4 = inlined_call_operand.vmem [shape: f32[32,16], index: 4, kind: input, shape index: {}]   ;;  %s1015_s5 = inlined_call_operand.vmem [shape: f32[1,16], index: 5, kind: input, shape index: {}]   ;;  %s1016_s6 = inlined_call_operand.vmem [shape: f32[16,128], index: 6, kind: input, shape index: {}]   ;;  %s1017_s7 = inlined_call_operand.vmem [shape: f32[1,128], index: 7, kind: input, shape index: {}]   ;;  %s1018_s8 = inlined_call_operand.vmem [shape: f32[8,16], index: 8, kind: input, shape index: {}]   ;;  %s1019_s9 = inlined_call_operand.vmem [shape: f32[1,16], index: 9, kind: input, shape index: {}]   ;;  %s1020_s10 = inlined_call_operand.vmem [shape: f32[16,32], index: 10, kind: input, shape index: {}]   ;;  %s1021_s11 = inlined_call_operand.vmem [shape: f32[1,32], index: 11, kind: input, shape index: {}]   ;;  %s1022_s12 = inlined_call_operand.vmem [shape: f32[32,128], index: 12, kind: input, shape index: {}]   ;;  %s1023_s13 = inlined_call_operand.vmem [shape: f32[1,128], index: 13, kind: input, shape index: {}]   ;;  %s1024_s14 = inlined_call_operand.hbm [shape: f32[8,128], index: 14, kind: output, shape index: {0}]   ;;  %s1025_s15 = inlined_call_operand.hbm [shape: f32[8,128], index: 15, kind: output, shape index: {1}]  }
   0x1   :  { %v52_v0 = vld [vmem:[%s1012_s2] sm:$0xff]  ;;  %v53_v1 = vld [vmem:[%s1012_s2 + $0x8] sm:$0xff]  ;;  %v54_v2 = vld [vmem:[%s1012_s2 + $0x10] sm:$0xff]  ;;  %700 = vmatprep.subr.bf16.mxu0 %v786_v3  ;;  %656 = vmatprep.mubr.msk.f32.mxu0 %vm787_vm0, %v788_v6 }
   0x2   :  { %v701_v4 = vpack.c.bf16 %v53_v1, %v52_v0  ;;  %v55_v5 = vld [vmem:[%s1012_s2 + $0x18] sm:$0xff]  ;;  %712 = vmatprep.subr.bf16.mxu1 %v786_v3  ;;  %667 = vmatprep.mubr.msk.f32.mxu1 %vm787_vm0, %v788_v6  ;;  %v142_v8 = vld [vmem:[%s1014_s4] sm:$0xff]  ;;  %v143_v9 = vld [vmem:[%s1014_s4 + $0x8] sm:$0xff] }
   0x3   :  { %v704_v7 = vpack.c.bf16 %v55_v5, %v54_v2  ;;  %v56_v10 = vld [vmem:[%s1012_s2 + $0x20] sm:$0xff]  ;;  %v57_v11 = vld [vmem:[%s1012_s2 + $0x28] sm:$0xff]  ;;  %v713_v12 = vpack.c.bf16 %v143_v9, %v142_v8 }
   0x4   :  { %702 = vmatpush3.bf16.msra.mxu0 %v701_v4 }
   0x5   :  { %703 = vmatprep.subr.bf16.mxu0 %v786_v3 }
   0x6   :  { %22 = vsyncpa [#allocation5], 0  ;;  %714 = vmatpush3.bf16.msra.mxu1 %v713_v12  ;;  %v707_v13 = vpack.c.bf16 %v57_v11, %v56_v10  ;;  %v58_v14 = vld [vmem:[%s1012_s2 + $0x30] sm:$0xff]  ;;  %v59_v15 = vld [vmem:[%s1012_s2 + $0x38] sm:$0xff]  ;;  %vm67_vm1 = vcmask 523264   ;;  %vm153_vm2 = vcmask 261120  }
   0x7   :  { %715 = vmatprep.subr.bf16.mxu1 %v786_v3  ;;  %v710_v16 = vpack.c.bf16 %v59_v15, %v58_v14  ;;  %v51_v17 = vld [vmem:[%s1010_s0] sm:$0xff]  ;;  %v144_v18 = vld [vmem:[%s1014_s4 + $0x10] sm:$0xff]  ;;  %v145_v19 = vld [vmem:[%s1014_s4 + $0x18] sm:$0xff]  ;;  %vm237_vm3 = vcmask 130048   ;;  %s789_s20 = smov 120   ;;  %vm329_vm4 = vcmask 64512  }
   0x8   :  { %705 = vmatpush3.bf16.msra.mxu0 %v704_v7  ;;  %v716_v20 = vpack.c.bf16 %v145_v19, %v144_v18  ;;  %v601_v21 = vld [vmem:[%s1013_s3] ss:$0 sm:$0xff]  ;;  %v229_v27 = vld [vmem:[%s1016_s6 + $0x8] sm:$0xff]  ;;  %v489_v57 = vld [vmem:[%s1022_s12 + $0x10] sm:$0xff] }
   0x9   :  { %706 = vmatprep.subr.bf16.mxu0 %v786_v3  ;;  %v228_v26 = vld [vmem:[%s1016_s6] sm:$0xff]  ;;  %v405_v47 = vld [vmem:[%s1020_s10 + $0x8] sm:$0xff]  ;;  %v490_v58 = vld [vmem:[%s1022_s12 + $0x18] sm:$0xff] }
   0xa   :  { %717 = vmatpush3.bf16.msra.mxu1 %v716_v20  ;;  %v719_v28 = vpack.c.bf16 %v229_v27, %v228_v26  ;;  %v603_v29 = vld [vmem:[%s1015_s5] ss:$0 sm:$0xff]  ;;  %v488_v50 = vld [vmem:[%s1022_s12 + $0x8] sm:$0xff]  ;;  %v728_v59 = vpack.c.bf16 %v490_v58, %v489_v57 }
   0xb   :  { %718 = vmatprep.subr.bf16.mxu1 %v786_v3  ;;  %v605_v34 = vld [vmem:[%s1017_s7] ss:$0 sm:$0xff] }
   0xc   :  { %708 = vmatpush3.bf16.msra.mxu0 %v707_v13  ;;  %v321_v40 = vld [vmem:[%s1018_s8] sm:$0xff] }
   0xd   :  { %709 = vmatprep.subr.bf16.mxu0 %v786_v3  ;;  %v311_v42 = vld [vmem:[%s1011_s1] sm:$0xff] }
   0xe   :  { %v404_v46 = vld [vmem:[%s1020_s10] sm:$0xff] }
   0xf   :  { %v722_v48 = vpack.c.bf16 %v405_v47, %v404_v46  ;;  %v487_v49 = vld [vmem:[%s1022_s12] sm:$0xff] }
  0x10   :  { %711 = vmatpush3.bf16.msra.mxu0 %v710_v16  ;;  %v725_v51 = vpack.c.bf16 %v488_v50, %v487_v49  ;;  %v607_v52 = vld [vmem:[%s1019_s9] ss:$0 sm:$0xff]  ;;  %s790_s9 = smov [#allocation4]  }
  0x11   :  { %721 = vmatprep.subr.bf16.mxu0 %v786_v3  ;;  %v609_v60 = vld [vmem:[%s1021_s11] ss:$0 sm:$0xff]  ;;  %s589_s3 = sshll.u32 %s790_s9, 4  ;;  %s590_s3 = int_to_ptr.vmem [resolvable:$true] %s589_s3 }
  0x12   :  { %s738_s17 = scalar_lea.vmem %s590_s3, 128  ;;  %p743_p1 = scmp.lt.s32.totalorder %s590_s3, %s590_s3 }
  0x13   :  { %657 = vmatmul.mubr.msk.f32.vlgmr.msra.gmra.mrb[0].mxu0 %vm67_vm1, %v51_v17  ;;  %p739_p0 = scmp.ne.s32.totalorder %s590_s3, %s738_s17  ;;  %p744_p2 = scmp.lt.s32.totalorder %s738_s17, %s738_s17 }
  0x14   :  { %686 = vmatprep.mubr.msk.f32.mxu0 %vm787_vm0, %v788_v6  ;;  %723 = vmatpush3.bf16.msra.mxu0 %v722_v48 }
  0x15   :  { %p745_p3 = por %p744_p2, %p743_p1 }
  0x17   :  { %p746_p4 = pnand %p745_p3, %p739_p0 }
  0xe6   :  { %v137_v22 = vpop.f32.mrb[0].mxu0 }
  0xe7   :  { %v138_v23 = vadd.f32 %v601_v21, %v137_v22  ;;  %v658_v24 = vpop.f32.mrb[1].mxu0 }
  0xe9   :  { %v141_v25 = vmax.f32 %v138_v23, 0.0 }
  0xeb   :  { %668 = vmatmul.mubr.msk.f32.vlgmr.msra.gmra.mrb[0].mxu1 %vm153_vm2, %v141_v25 }
  0xec   :  { %674 = vmatprep.mubr.msk.f32.mxu1 %vm787_vm0, %v788_v6  ;;  %720 = vmatpush3.bf16.msra.mxu1 %v719_v28 }
  0xed   :  { %677 = vmatprep.subr.mxu1 %v788_v6 }
 0x1be   :  { %v223_v30 = vpop.f32.mrb[0].mxu1 }
 0x1bf   :  { %v224_v31 = vadd.f32 %v603_v29, %v223_v30  ;;  %v669_v32 = vpop.f32.mrb[1].mxu1 }
 0x1c1   :  { %v227_v33 = vmax.f32 %v224_v31, 0.0 }
 0x1c3   :  { %675 = vmatmul.mubr.msk.f32.vlgmr.msra.gmra.mrb[2].mxu1 %vm237_vm3, %v227_v33 }
 0x1c4   :  { %679 = vmatprep.mubr.msk.f32.mxu1 %vm787_vm0, %v788_v6  ;;  %678 = vmatpush3.msra.mxu1 %v321_v40 }
 0x1c5   :  { %724 = vmatprep.subr.bf16.mxu1 %v786_v3 }
 0x296   :  { %v307_v35 = vpop.f32.mrb[2].mxu1 }
 0x297   :  { %v308_v36 = vadd.f32 %v605_v34, %v307_v35  ;;  %v676_v37 = vpop.f32.mrb[3].mxu1 }
 0x299   :  { %v312_v38 = vmul.f32 0.5, %v308_v36  ;;  %572 = vst [vmem:[#allocation4] sm:$0xff] %v308_v36 }
 0x29b   :  { %v313_v39 = vmul.f32 1.442695, %v312_v38 }
 0x29d   :  { %736 = vpow2.f32 %v313_v39 }
 0x2a7   :  { %v737_v41 = vpop.eup %736 }
 0x2a8   :  { %316 = vrot.lane.b32.xlu0 %v737_v41, %s789_s20 }
 0x31a   :  { %v317_v43 = vpop.permute.xlu0 %316 }
 0x31b   :  { %v319_v44 = vmul.f32 %v317_v43, %v311_v42 }
 0x31d   :  { %v320_v45 = vadd.f32 %v319_v44, %v308_v36 }
 0x31f   :  { %680 = vmatmul.mubr.msk.f32.vlgmr.msra.gmra.mrb[4].mxu1 %vm329_vm4, %v320_v45 }
 0x320   :  { %697 = vmatprep.mubr.msk.f32.mxu1 %vm787_vm0, %v788_v6  ;;  %726 = vmatpush3.bf16.msra.mxu1 %v725_v51 }
 0x321   :  { %727 = vmatprep.subr.bf16.mxu1 %v786_v3 }
 0x324   :  { %729 = vmatpush3.bf16.msra.mxu1 %v728_v59 }
 0x3f2   :  { %v399_v53 = vpop.f32.mrb[4].mxu1 }
 0x3f3   :  { %v400_v54 = vadd.f32 %v607_v52, %v399_v53  ;;  %v681_v55 = vpop.f32.mrb[5].mxu1 }
 0x3f5   :  { %v403_v56 = vmax.f32 %v400_v54, 0.0 }
 0x3f7   :  { %687 = vmatmul.mubr.msk.f32.vlgmr.msra.gmra.mrb[2].mxu0 %vm237_vm3, %v403_v56 }
 0x4ca   :  { %v482_v61 = vpop.f32.mrb[2].mxu0 }
 0x4cb   :  { %v483_v62 = vadd.f32 %v609_v60, %v482_v61  ;;  %v688_v63 = vpop.f32.mrb[3].mxu0 }
 0x4cd   :  { %v486_v0 = vmax.f32 %v483_v62, 0.0 }
 0x4cf   :  { %698 = vmatmul.mubr.msk.f32.vlgmr.msra.gmra.mrb[6].mxu1 %vm153_vm2, %v486_v0 }
 0x4d0   :  { %749 = shalt.err (!%p746_p4)
}
 0x4d1   :  { %s750_s11 = scalar_lea.hbm %s1025_s15, 128 }
 0x4d2   :  { %p751_p5 = scmp.ne.s32.totalorder %s1025_s15, %s750_s11  ;;  %p754_p6 = scmp.lt.u32.totalorder %s750_s11, %s1025_s15 }
 0x4d4   :  { %p756_p7 = pnand %p754_p6, %p751_p5 }
 0x4d6   :  { %759 = shalt.err (!%p756_p7)
}
 0x4d7   :  { %592 = dma.vmem_to_hbm [thread:$0]  %s590_s3, 128, %s1025_s15, [#allocation5]   ;;  %v611_v1 = vld [vmem:[%s1023_s13] ss:$0 sm:$0xff] }
 0x4d8   :  { %s791_s23 = smov [#allocation2]  }
 0x4d9   :  { %s579_s24 = sshll.u32 %s791_s23, 4  ;;  %s580_s24 = int_to_ptr.vmem [resolvable:$true] %s579_s24 }
 0x4da   :  { %s760_s25 = scalar_lea.vmem %s580_s24, 128  ;;  %p765_p9 = scmp.lt.s32.totalorder %s580_s24, %s580_s24 }
 0x4db   :  { %p761_p8 = scmp.ne.s32.totalorder %s580_s24, %s760_s25  ;;  %p766_p10 = scmp.lt.s32.totalorder %s760_s25, %s760_s25 }
 0x4dd   :  { %p767_p11 = por %p766_p10, %p765_p9 }
 0x4df   :  { %p768_p12 = pnand %p767_p11, %p761_p8 }
 0x5a2   :  { %v567_v2 = vpop.f32.mrb[6].mxu1 }
 0x5a3   :  { %v568_v3 = vadd.f32 %v611_v1, %v567_v2  ;;  %v699_v4 = vpop.f32.mrb[7].mxu1 }
 0x5a5   :  { %571 = vst [vmem:[#allocation2] sm:$0xff] %v568_v3 }
 0x5a6   :  { %771 = shalt.err (!%p768_p12)
}
 0x5a7   :  { %s772_s26 = scalar_lea.hbm %s1024_s14, 128 }
 0x5a8   :  { %p773_p13 = scmp.ne.s32.totalorder %s1024_s14, %s772_s26  ;;  %p776_p0 = scmp.lt.u32.totalorder %s772_s26, %s1024_s14 }
 0x5aa   :  { %p778_p1 = pnand %p776_p0, %p773_p13 }
 0x5ac   :  { %781 = shalt.err (!%p778_p1)
}
 0x5ad   :  { %582 = dma.vmem_to_hbm [thread:$0]  %s580_s24, 128, %s1024_s14, [#allocation3]  }
 0x5ae   :  { %782 = dma.done.wait [#allocation3], 128  }
 0x5af   :  { %783 = vsyncadd [#allocation3], 4294967168 }
 0x5b0   :  { %784 = dma.done.wait [#allocation5], 128  }
 0x5b1   :  { %785 = vsyncadd [#allocation5], 4294967168 }
 0x5b2   :  { %599 = vsyncpa [#allocation3], 1 }
 0x5b3   :  { %600 = vsyncpa [#allocation5], 1 }

</bundles_post_ra>
